<compile_context>
chip_gen: v7x
topology: tpu7x:2x2x1
jax: 0.10.0
libtpu: 0.0.40
codegen_flags: <defaults>
</compile_context>

<pallas_src>
import functools
import math

import jax
import jax.numpy as jnp
from jax.experimental import pallas as pl
from jax.experimental.pallas import tpu as pltpu


# ----------------------------------------------------------------------------
# Pallas kernel: fused multi-layer perceptron on one (tm, in_dim) token tile
# ----------------------------------------------------------------------------

def _mlp_kernel(x_ref, *refs, num_layers):
    """refs = (w_0, b_0, w_1, b_1, ..., w_{L-1}, b_{L-1}, o_ref).

    x_ref : (tm, C0)       f32   (unpadded; cast to bf16 here, in VMEM)
    w_l   : (C_l, C_{l+1}) bf16  (whole-array block, (in, out) layout)
    b_l   : (1, C_{l+1})   f32
    o_ref : (tm, C_L)      f32   (unpadded last dim; tiny writeback stream)
    """
    assert num_layers >= 1
    o_ref = refs[-1]
    wb = refs[:-1]

    h = x_ref[...].astype(jnp.bfloat16)                   # bf16 MXU operand
    acc = None
    for l in range(num_layers):
        w = wb[2 * l][...]                                # bf16 (Cin, Cout)
        b = wb[2 * l + 1][...]                            # f32  (1, Cout)
        acc = jnp.dot(h, w, preferred_element_type=jnp.float32) + b
        if l < num_layers - 1:
            acc = jnp.maximum(acc, 0.0)                   # fused ReLU
            h = acc.astype(jnp.bfloat16)                  # bf16 for next pass
    o_ref[...] = acc.astype(o_ref.dtype)


# ----------------------------------------------------------------------------
# Wrapper: tiling, VMEM budgeting, pallas_call
# ----------------------------------------------------------------------------

def _cdiv(a, b):
    return -(-a // b)


def _round_up(x, m):
    return _cdiv(x, m) * m


def _vmem_budget_bytes():
    """Generation-aware VMEM working budget (conservative fallback = v7x)."""
    try:
        cap = int(pltpu.get_tpu_info().vmem_capacity_bytes)
    except Exception:
        cap = 0
    if cap <= 0:
        cap = 64 * 1024 * 1024        # v7x per-TensorCore VMEM
    return int(cap * 0.7)             # leave headroom for compiler scratch


def _pick_tile_m(M, dims, budget_bytes):
    """Largest M tile whose VMEM footprint fits, never yielding grid=(1,)
    when M >= 256 (keeps both v7x TensorCores busy and pipelining alive)."""
    in_dim, out_dim, max_dim = dims[0], dims[-1], max(dims)
    # Resident weights + biases, single-buffered (constant index maps).
    wb_bytes = sum(dims[l] * dims[l + 1] * 2 + dims[l + 1] * 4
                   for l in range(len(dims) - 1))
    if wb_bytes > budget_bytes:
        # TODO(synk): fall back to tiling the hidden/output dims (extra grid
        # axis with a VMEM accumulator) instead of keeping every layer's
        # weights resident, for configs whose weights exceed VMEM (v7x 64 MiB).
        raise ValueError(
            f"MLP weights ({wb_bytes} B) exceed the VMEM budget "
            f"({budget_bytes} B); hidden-dim tiling fallback not implemented.")

    def footprint(tm):
        x_bytes = tm * in_dim * 4 * 2          # f32 input, double-buffered
        o_bytes = tm * out_dim * 4 * 2         # f32 output, double-buffered
        act_bytes = tm * max_dim * 12          # rough bound on live intermediates
        return wb_bytes + x_bytes + o_bytes + act_bytes

    cands = [t for t in (2048, 1024, 512, 256, 128) if t <= _round_up(M, 8)]
    if not cands:
        cands = [_round_up(max(M, 1), 8)]
    tm = cands[-1]
    for t in cands:
        if M >= 256 and _cdiv(M, t) < 2:
            continue                           # never a 1-step grid at scale
        if footprint(t) <= budget_bytes:
            tm = t
            break
    return tm, footprint(tm)


def _invariant_spec(shape):
    """BlockSpec for a grid-invariant (constant index_map) block.

    Single-buffered when supported: the block is DMA'd once and never
    re-fetched, so double-buffering only wastes VMEM."""
    if hasattr(pl, "Buffered"):
        try:
            return pl.BlockSpec(shape, lambda i: (0, 0),
                                pipeline_mode=pl.Buffered(1))
        except TypeError:
            pass
    return pl.BlockSpec(shape, lambda i: (0, 0))


def mlp_pallas(x2d, weights, biases):
    """x2d: (M, in_dim) f32.  weights[l]: (out_l, in_l) (PyTorch nn.Linear
    layout), biases[l]: (out_l,).  Returns (M, out_dim) f32."""
    M, in_dim = x2d.shape
    num_layers = len(weights)
    dims = [in_dim] + [int(w.shape[0]) for w in weights]

    budget = _vmem_budget_bytes()
    tm, footprint = _pick_tile_m(M, dims, budget)
    grid = (_cdiv(M, tm),)

    # Input: unpadded, un-cast; last block dim == full array dim -> legal.
    args = [x2d]
    in_specs = [pl.BlockSpec((tm, in_dim), lambda i: (i, 0))]
    for l in range(num_layers):
        w, b = weights[l], biases[l]
        cin, cout = dims[l], dims[l + 1]
        args.append(jnp.asarray(w).T.astype(jnp.bfloat16))               # (cin, cout)
        args.append(jnp.asarray(b).astype(jnp.float32).reshape(1, cout))
        in_specs.append(_invariant_spec((cin, cout)))
        in_specs.append(_invariant_spec((1, cout)))

    vmem_limit = int(min(budget, max(32 * 1024 * 1024, footprint + (4 << 20))))

    out = pl.pallas_call(
        functools.partial(_mlp_kernel, num_layers=num_layers),
        grid=grid,
        in_specs=in_specs,
        out_specs=pl.BlockSpec((tm, dims[-1]), lambda i: (i, 0)),
        out_shape=jax.ShapeDtypeStruct((M, dims[-1]), jnp.float32),
        compiler_params=pltpu.CompilerParams(
            dimension_semantics=("parallel",),
            vmem_limit_bytes=vmem_limit),
    )(*args)
    return out


def mlp_forward(x, weights, biases):
    """Matches MLP.forward: flatten leading dims, apply layers, restore shape."""
    lead = x.shape[:-1]
    out = mlp_pallas(x.reshape(-1, x.shape[-1]), weights, biases)
    return out.reshape(*lead, -1)


# ----------------------------------------------------------------------------
# Reference (plain JAX, f32) and deterministic init
# ----------------------------------------------------------------------------

def mlp_reference(x, weights, biases):
    h = x.reshape(-1, x.shape[-1]).astype(jnp.float32)
    for l, (w, b) in enumerate(zip(weights, biases)):
        h = h @ w.T + b
        if l < len(weights) - 1:
            h = jnp.maximum(h, 0.0)
    return h.reshape(*x.shape[:-1], -1)


def init_mlp_params(key, in_dim, out_dim, hidden_list):
    """nn.Linear default init: U(-1/sqrt(fan_in), 1/sqrt(fan_in))."""
    dims = [in_dim] + list(hidden_list) + [out_dim]
    ws, bs = [], []
    for l in range(len(dims) - 1):
        key, kw, kb = jax.random.split(key, 3)
        bound = 1.0 / math.sqrt(dims[l])
        ws.append(jax.random.uniform(kw, (dims[l + 1], dims[l]),
                                     jnp.float32, -bound, bound))
        bs.append(jax.random.uniform(kb, (dims[l + 1],),
                                     jnp.float32, -bound, bound))
    return ws, bs


# ----------------------------------------------------------------------------
# Main
# ----------------------------------------------------------------------------

if __name__ == "__main__":
    key = jax.random.PRNGKey(0)

    in_dim, out_dim = 32, 4
    hidden_list = [64, 64]
    batch_shape = (2, 16, 16)            # leading dims, flattened to M = 512

    kp, kx = jax.random.split(key)
    weights, biases = init_mlp_params(kp, in_dim, out_dim, hidden_list)
    x = jax.random.normal(kx, (*batch_shape, in_dim), jnp.float32)

    fwd = jax.jit(mlp_forward)
    out = jax.block_until_ready(fwd(x, weights, biases))

    ref = mlp_reference(x, weights, biases)

    assert out.shape == (*batch_shape, out_dim), out.shape
    assert bool(jnp.all(jnp.isfinite(out)))
    # bf16 MXU operands with f32 accumulation -> relaxed tolerance vs f32 ref.
    assert bool(jnp.allclose(out, ref, rtol=5e-2, atol=5e-2)), float(
        jnp.max(jnp.abs(out - ref)))

    print("KERNEL_OK")
</pallas_src>

<mosaic_0001>
module attributes {stable_mosaic.version = 11 : i64} {
  func.func @_mlp_kernel(%arg0: i32, %arg1: memref<256x32xf32, #tpu.memory_space<vmem>>, %arg2: memref<32x64xbf16, #tpu.memory_space<vmem>>, %arg3: memref<1x64xf32, #tpu.memory_space<vmem>>, %arg4: memref<64x64xbf16, #tpu.memory_space<vmem>>, %arg5: memref<1x64xf32, #tpu.memory_space<vmem>>, %arg6: memref<64x4xbf16, #tpu.memory_space<vmem>>, %arg7: memref<1x4xf32, #tpu.memory_space<vmem>>, %arg8: memref<256x4xf32, #tpu.memory_space<vmem>>) attributes {dimension_semantics = [#tpu.dimension_semantics<parallel>], iteration_bounds = array<i64: 2>, scalar_prefetch = 0 : i64, scratch_operands = 0 : i64, tpu.core_type = #tpu.core_type<tc>, window_params = [{transform_indices = @transform_0, window_bounds = array<i64: 256, 32>}, {pipeline_mode = #tpu.pipeline_mode<synchronous>, transform_indices = @transform_1, window_bounds = array<i64: 32, 64>}, {pipeline_mode = #tpu.pipeline_mode<synchronous>, transform_indices = @transform_2, window_bounds = array<i64: 1, 64>}, {pipeline_mode = #tpu.pipeline_mode<synchronous>, transform_indices = @transform_3, window_bounds = array<i64: 64, 64>}, {pipeline_mode = #tpu.pipeline_mode<synchronous>, transform_indices = @transform_4, window_bounds = array<i64: 1, 64>}, {pipeline_mode = #tpu.pipeline_mode<synchronous>, transform_indices = @transform_5, window_bounds = array<i64: 64, 4>}, {pipeline_mode = #tpu.pipeline_mode<synchronous>, transform_indices = @transform_6, window_bounds = array<i64: 1, 4>}, {transform_indices = @transform_7, window_bounds = array<i64: 256, 4>}]} {
    %c0 = arith.constant 0 : index
    %c0_0 = arith.constant 0 : index
    %0 = vector.load %arg1[%c0, %c0_0] : memref<256x32xf32, #tpu.memory_space<vmem>>, vector<256x32xf32>
    %1 = arith.truncf %0 : vector<256x32xf32> to vector<256x32xbf16>
    %c0_1 = arith.constant 0 : index
    %c0_2 = arith.constant 0 : index
    %2 = vector.load %arg2[%c0_1, %c0_2] : memref<32x64xbf16, #tpu.memory_space<vmem>>, vector<32x64xbf16>
    %c0_3 = arith.constant 0 : index
    %c0_4 = arith.constant 0 : index
    %3 = vector.load %arg3[%c0_3, %c0_4] : memref<1x64xf32, #tpu.memory_space<vmem>>, vector<1x64xf32>
    %cst = arith.constant dense<0.000000e+00> : vector<256x64xf32>
    %4 = tpu.matmul %1, %2, %cst {dimension_numbers = #tpu.dot_dimension_numbers<[1], [0], [0], [1], [0, 0, 1, 1], [], []>} : vector<256x32xbf16>, vector<32x64xbf16>, vector<256x64xf32> -> vector<256x64xf32>
    %5 = vector.broadcast %3 : vector<1x64xf32> to vector<256x64xf32>
    %6 = arith.addf %4, %5 : vector<256x64xf32>
    %cst_5 = arith.constant 0.000000e+00 : f32
    %7 = vector.broadcast %cst_5 : f32 to vector<256x64xf32>
    %8 = arith.maximumf %6, %7 : vector<256x64xf32>
    %9 = arith.truncf %8 : vector<256x64xf32> to vector<256x64xbf16>
    %c0_6 = arith.constant 0 : index
    %c0_7 = arith.constant 0 : index
    %10 = vector.load %arg4[%c0_6, %c0_7] : memref<64x64xbf16, #tpu.memory_space<vmem>>, vector<64x64xbf16>
    %c0_8 = arith.constant 0 : index
    %c0_9 = arith.constant 0 : index
    %11 = vector.load %arg5[%c0_8, %c0_9] : memref<1x64xf32, #tpu.memory_space<vmem>>, vector<1x64xf32>
    %cst_10 = arith.constant dense<0.000000e+00> : vector<256x64xf32>
    %12 = tpu.matmul %9, %10, %cst_10 {dimension_numbers = #tpu.dot_dimension_numbers<[1], [0], [0], [1], [0, 0, 1, 1], [], []>} : vector<256x64xbf16>, vector<64x64xbf16>, vector<256x64xf32> -> vector<256x64xf32>
    %13 = vector.broadcast %11 : vector<1x64xf32> to vector<256x64xf32>
    %14 = arith.addf %12, %13 : vector<256x64xf32>
    %cst_11 = arith.constant 0.000000e+00 : f32
    %15 = vector.broadcast %cst_11 : f32 to vector<256x64xf32>
    %16 = arith.maximumf %14, %15 : vector<256x64xf32>
    %17 = arith.truncf %16 : vector<256x64xf32> to vector<256x64xbf16>
    %c0_12 = arith.constant 0 : index
    %c0_13 = arith.constant 0 : index
    %18 = vector.load %arg6[%c0_12, %c0_13] : memref<64x4xbf16, #tpu.memory_space<vmem>>, vector<64x4xbf16>
    %c0_14 = arith.constant 0 : index
    %c0_15 = arith.constant 0 : index
    %19 = vector.load %arg7[%c0_14, %c0_15] : memref<1x4xf32, #tpu.memory_space<vmem>>, vector<1x4xf32>
    %cst_16 = arith.constant dense<0.000000e+00> : vector<256x4xf32>
    %20 = tpu.matmul %17, %18, %cst_16 {dimension_numbers = #tpu.dot_dimension_numbers<[1], [0], [0], [1], [0, 0, 1, 1], [], []>} : vector<256x64xbf16>, vector<64x4xbf16>, vector<256x4xf32> -> vector<256x4xf32>
    %21 = vector.broadcast %19 : vector<1x4xf32> to vector<256x4xf32>
    %22 = arith.addf %20, %21 : vector<256x4xf32>
    %c0_17 = arith.constant 0 : index
    %c0_18 = arith.constant 0 : index
    %23 = vector.load %arg8[%c0_17, %c0_18] : memref<256x4xf32, #tpu.memory_space<vmem>>, vector<256x4xf32>
    tpu.vector_store %arg8[%c0_17, %c0_18], %22 {strides = array<i32>} : memref<256x4xf32, #tpu.memory_space<vmem>>, vector<256x4xf32>,
    return
  }
  func.func @transform_0(%arg0: i32) -> (i32, i32) {
    %c0_i32 = arith.constant 0 : i32
    %c0_i32_0 = arith.constant 0 : i32
    return %arg0, %c0_i32 : i32, i32
  }
  func.func @transform_1(%arg0: i32) -> (i32, i32) {
    %c0_i32 = arith.constant 0 : i32
    %c0_i32_0 = arith.constant 0 : i32
    %c0_i32_1 = arith.constant 0 : i32
    return %c0_i32, %c0_i32_0 : i32, i32
  }
  func.func @transform_2(%arg0: i32) -> (i32, i32) {
    %c0_i32 = arith.constant 0 : i32
    %c0_i32_0 = arith.constant 0 : i32
    %c0_i32_1 = arith.constant 0 : i32
    return %c0_i32, %c0_i32_0 : i32, i32
  }
  func.func @transform_3(%arg0: i32) -> (i32, i32) {
    %c0_i32 = arith.constant 0 : i32
    %c0_i32_0 = arith.constant 0 : i32
    %c0_i32_1 = arith.constant 0 : i32
    return %c0_i32, %c0_i32_0 : i32, i32
  }
  func.func @transform_4(%arg0: i32) -> (i32, i32) {
    %c0_i32 = arith.constant 0 : i32
    %c0_i32_0 = arith.constant 0 : i32
    %c0_i32_1 = arith.constant 0 : i32
    return %c0_i32, %c0_i32_0 : i32, i32
  }
  func.func @transform_5(%arg0: i32) -> (i32, i32) {
    %c0_i32 = arith.constant 0 : i32
    %c0_i32_0 = arith.constant 0 : i32
    %c0_i32_1 = arith.constant 0 : i32
    return %c0_i32, %c0_i32_0 : i32, i32
  }
  func.func @transform_6(%arg0: i32) -> (i32, i32) {
    %c0_i32 = arith.constant 0 : i32
    %c0_i32_0 = arith.constant 0 : i32
    %c0_i32_1 = arith.constant 0 : i32
    return %c0_i32, %c0_i32_0 : i32, i32
  }
  func.func @transform_7(%arg0: i32) -> (i32, i32) {
    %c0_i32 = arith.constant 0 : i32
    %c0_i32_0 = arith.constant 0 : i32
    return %arg0, %c0_i32 : i32, i32
  }
}

</mosaic_0001>

<bundles_post_ra>
// kernel: mlp_forward.1
= control target key start
LH: loop header
LB: loop body
LE: loop exit
PB: predicated region body
PF: predicated region fallthrough
CT: control target
= control target key end

     0   :  { %12 = vsyncpa [#allocation3], 0  ;;  %s2094_s0 = inlined_call_operand.hbm [shape: f32[512,32], index: 0, kind: input, shape index: {}]   ;;  %s2095_s1 = inlined_call_operand.vmem [shape: bf16[32,64], index: 1, kind: input, shape index: {}]   ;;  %s2096_s2 = inlined_call_operand.vmem [shape: f32[1,64], index: 2, kind: input, shape index: {}]   ;;  %s2097_s3 = inlined_call_operand.vmem [shape: bf16[64,64], index: 3, kind: input, shape index: {}]   ;;  %s2098_s4 = inlined_call_operand.vmem [shape: f32[1,64], index: 4, kind: input, shape index: {}]   ;;  %s2099_s5 = inlined_call_operand.vmem [shape: bf16[64,4], index: 5, kind: input, shape index: {}]   ;;  %s2100_s6 = inlined_call_operand.vmem [shape: f32[1,4], index: 6, kind: input, shape index: {}]   ;;  %s2101_s7 = inlined_call_operand.vmem [shape: f32[512,4], index: 7, kind: output, shape index: {}]  }
   0x1   :  { %14 = vsyncpa [#allocation3 + $0x1], 0  ;;  %s1689_s24 = smov 0   ;;  %s1691_s25 = smov 0  }
   0x2   :  { %s1693_s26 = smov 0   ;;  %s1695_s27 = smov 0  }
   0x3 LB: > { %s1276_s28 = sadd.s32 4294967295, %s1644_s27   ;;  %s1709_s29 = sadd.s32 1, %s1644_s27   ;;  %s1644_s27 = sphi %s1695_s27, %s2108_s27   ;;  %s1640_s26 = sphi %s1693_s26, %s2107_s26   ;;  %s1636_s25 = sphi %s1691_s25, %s2106_s25   ;;  %s1632_s24 = sphi %s1689_s24, %s2105_s24  }
   0x4   : > { %s24_s30 = ssub.s32 %s1644_s27, %s1709_s29  ;;  %s27_s8 = sadd.s32 1, %s1640_s26 }
   0x5   : > { %p25_p0 = scmp.eq.s32.totalorder %s24_s30, 0  ;;  %p34_p1 = scmp.ne.s32.totalorder %s1640_s26, %s1636_s25 }
   0x6   : > { %p35_p2 = scmp.eq.s32.totalorder %s1644_s27, 0  ;;  %p40_p3 = scmp.ne.s32.totalorder %s1636_s25, %s1632_s24 }
   0x7   : > { %s1719_s9 = scalar_select %p25_p0, %s1640_s26, %s27_s8  }
   0x8   : > { %p36_p4 = por %p35_p2, %p34_p1  ;;  %p41_p5 = scmp.eq.s32.totalorder %s1276_s28, 0 }
   0x9   : > { %p1535_p6 = scmp.lt.s32.totalorder %s1644_s27, 2  ;;  %s234_s11 = sand.u32 1, %s1640_s26  }
   0xa   : > { %p1724_p7 = por %p41_p5, %p40_p3  ;;  %s1280_s12 = sshll.u32 %s234_s11, 8 }
   0xb   : > { %s1350_s13 = sshll.u32 %s1644_s27, 12  ;;  %s238_s17 = scalar_lea.vmem [#allocation2], %s1280_s12 }
   0xc   : > { %s1733_s16 = scalar_lea.hbm %s2094_s0, %s1350_s13  ;;  %s245_s18 = sshll.u32 %s238_s17, 4  ;;  %s1735_s18 = int_to_ptr.vmem [resolvable:$true] %s245_s18 }
   0xd   : > { %p1737_p8 = pnand %p1535_p6, %p36_p4  ;;  %s1742_s20 = scalar_lea.sflag [#allocation3], %s234_s11 }
   0xe   : > { %s1580_s21 = scalar_lea.hbm %s1733_s16, 4096  ;;  %s1585_s24 = scalar_lea.hbm %s2094_s0, 8192 }
   0xf   : > { %p1581_p10 = scmp.ne.s32.totalorder %s1733_s16, %s1580_s21  ;;  %p1582_p11 = pneg %p1737_p8 }
  0x10   : > { %p1586_p0 = scmp.lt.u32.totalorder %s1733_s16, %s2094_s0  ;;  %p1587_p1 = scmp.lt.u32.totalorder %s1585_s24, %s1580_s21 }
  0x11   : > { %p1583_p12 = pnand %p1582_p11, %p1581_p10  ;;  %p1589_p3 = scmp.lt.u32.totalorder %s1580_s21, %s1733_s16 }
  0x12   : > { %p1588_p2 = por %p1587_p1, %p1586_p0 }
  0x13   : > { %p1584_p13 = pneg %p1583_p12 }
  0x14   : > { %p1590_p4 = por %p1589_p3, %p1588_p2 }
  0x16   : > { %p1591_p5 = pnand %p1590_p4, %p1584_p13 }
  0x18   : > { %1594 = shalt.err (!%p1591_p5)
}
  0x19   : > { %s1595_s11 = scalar_lea.vmem %s1735_s18, 4096  ;;  %s1646_s12 = smov [#allocation2]  }
  0x1a   : > { %p1596_p6 = scmp.ne.s32.totalorder %s1735_s18, %s1595_s11  ;;  %s1600_s13 = sshll.u32 %s1646_s12, 4  ;;  %s1601_s13 = int_to_ptr.vmem [resolvable:$false] %s1600_s13 }
  0x1b   : > { %s1602_s14 = scalar_lea.vmem %s1601_s13, 8192  ;;  %p1603_p9 = scmp.lt.s32.totalorder %s1735_s18, %s1601_s13 }
  0x1c   : > { %p1598_p10 = pnand %p1596_p6, %p1582_p11  ;;  %p1604_p0 = scmp.lt.s32.totalorder %s1602_s14, %s1595_s11 }
  0x1e   : > { %p1599_p12 = pneg %p1598_p10  ;;  %p1605_p1 = por %p1604_p0, %p1603_p9 }
  0x20   : > { %p1606_p2 = pnand %p1605_p1, %p1599_p12 }
  0x22   : > { %1609 = shalt.err (!%p1606_p2)
}
  0x23   : > { %s1647_s15 = smov 128   ;;  %s1648_s17 = smov 8  }
  0x24   : > { %1534 = dma.hbm_to_vmem [thread:$0]  (!%p1737_p8), %s1733_s16, 4096, %s1735_s18, %s1742_s20, %s1647_s15, %s1647_s15, %s1648_s17  }
  0x25   : > { %p253_p11 = scmp.lt.s32.totalorder %s1644_s27, 3  ;;  %p2104_p13 = scmp.ge.s32.totalorder %s1644_s27, 1 }
  0x27   : > { %p254_p3 = pnand %p2104_p13, %p253_p11 }
  0x28   : > { %s259_s21 = sand.u32 (!%p254_p3), 1, %s1636_s25  }
  0x29   : > { %257 = sbr.rel (%p254_p3) target bundleno = 776 (0x308), region = 48  ;;  %s1284_s22 = sshll.u32 (!%p254_p3), %s259_s21, 8 }
  0x2a   : > { %s260_s23 = scalar_lea.sflag (!%p254_p3), [#allocation3], %s259_s21  ;;  %s1774_s24 = scalar_lea.vmem (!%p254_p3), [#allocation2], %s1284_s22 }
  0x30   : > { %1627 = dma.done.wait (%p1724_p7), %s260_s23, 4096  }
  0x31   : > { %1629 = vsyncadd (%p1724_p7), %s260_s23, 4294963200  ;;  %v1570_v0 = vld [vmem:[%s2095_s1] sm:$0xff]   ;;  %v1571_v1 = vld [vmem:[%s2095_s1 + $0x8] sm:$0xff]   ;;  %vm373_vm0 = vcmask 261120   ;;  %vm670_vm1 = vcmask 523264   ;;  %s1285_s11 = sshll.u32 %s1276_s28, 5 }
  0x32   : > { %1409 = vmatprep.subr.bf16.mxu0 %v1570_v0  ;;  %v302_v2 = vld [vmem:[%s1774_s24] sm:$0xff]  ;;  %v303_v3 = vld [vmem:[%s1774_s24 + $0x8] sm:$0xff]  ;;  %1525 = vmatprep.subr.bf16.mxu1 %v1570_v0  ;;  %v304_v5 = vld [vmem:[%s1774_s24 + $0x10] sm:$0xff]  ;;  %p296_p7 = scmp.lt.s32.totalorder %s1285_s11, 63  ;;  %vm1176_vm2 = vcmask 31744  }
  0x33   : > { %1410 = vmatpush3.bf16.msra.mxu0 %v1570_v0  ;;  %v334_v4 = vpack.c.bf16 %v303_v3, %v302_v2  ;;  %v305_v6 = vld [vmem:[%s1774_s24 + $0x18] sm:$0xff]  ;;  %1527 = vmatpush3.bf16.msra.mxu1 %v1570_v0  ;;  %v306_v7 = vld [vmem:[%s1774_s24 + $0x20] sm:$0xff]  ;;  %v307_v8 = vld [vmem:[%s1774_s24 + $0x28] sm:$0xff] }
  0x34   : > { %1411 = vmatprep.subr.bf16.mxu0 %v1571_v1  ;;  %1526 = vmatprep.subr.bf16.mxu1 %v1571_v1  ;;  %v335_v9 = vpack.c.bf16 %v305_v6, %v304_v5  ;;  %v336_v10 = vpack.c.bf16 %v307_v8, %v306_v7  ;;  %v318_v11 = vld [vmem:[%s1774_s24 + $0x80] sm:$0xff]  ;;  %v319_v12 = vld [vmem:[%s1774_s24 + $0x88] sm:$0xff]  ;;  %v320_v14 = vld [vmem:[%s1774_s24 + $0x90] sm:$0xff]  ;;  %s2110_s11 = smov (!%p296_p7, %s1285_s11), 63 }
  0x35   : > { %1413 = vmatprep.mubr.msk.bf16.mxu0 %vm373_vm0, %v334_v4  ;;  %v342_v13 = vpack.c.bf16 %v319_v12, %v318_v11  ;;  %v321_v15 = vld [vmem:[%s1774_s24 + $0x98] sm:$0xff]  ;;  %v322_v16 = vld [vmem:[%s1774_s24 + $0xa0] sm:$0xff]  ;;  %v323_v18 = vld [vmem:[%s1774_s24 + $0xa8] sm:$0xff]  ;;  %s1286_s12 = sshll.u32 %s2110_s11, 3 }
  0x36   : > { %v343_v17 = vpack.c.bf16 %v321_v15, %v320_v14  ;;  %v308_v19 = vld [vmem:[%s1774_s24 + $0x30] sm:$0xff]  ;;  %v309_v20 = vld [vmem:[%s1774_s24 + $0x38] sm:$0xff]  ;;  %v310_v21 = vld [vmem:[%s1774_s24 + $0x40] sm:$0xff]  ;;  %v344_v22 = vpack.c.bf16 %v323_v18, %v322_v16  ;;  %s1983_s21 = scalar_lea.vmem %s2101_s7, %s1286_s12 }
  0x37   : > { %1412 = vmatpush3.bf16.msra.mxu0 %v1571_v1  ;;  %1528 = vmatpush3.bf16.msra.mxu1 %v1571_v1  ;;  %v311_v23 = vld [vmem:[%s1774_s24 + $0x48] sm:$0xff]  ;;  %v324_v24 = vld [vmem:[%s1774_s24 + $0xb0] sm:$0xff]  ;;  %v325_v25 = vld [vmem:[%s1774_s24 + $0xb8] sm:$0xff]  ;;  %v337_v29 = vpack.c.bf16 %v309_v20, %v308_v19 }
  0x38   : > { %1429 = vmatprep.mubr.msk.bf16.mxu1 %vm373_vm0, %v342_v13  ;;  %v326_v26 = vld [vmem:[%s1774_s24 + $0xc0] sm:$0xff]  ;;  %v327_v27 = vld [vmem:[%s1774_s24 + $0xc8] sm:$0xff]  ;;  %v338_v31 = vpack.c.bf16 %v311_v23, %v310_v21  ;;  %v345_v32 = vpack.c.bf16 %v325_v25, %v324_v24  ;;  %v1574_v33 = vld [vmem:[%s2097_s3 + $0x10] sm:$0xff]  }
  0x39   : > { %v1572_v28 = vld [vmem:[%s2097_s3] sm:$0xff]   ;;  %v1573_v30 = vld [vmem:[%s2097_s3 + $0x8] sm:$0xff]   ;;  %v346_v34 = vpack.c.bf16 %v327_v27, %v326_v26  ;;  %v312_v35 = vld [vmem:[%s1774_s24 + $0x50] sm:$0xff] }
  0x3a   : > { %1414 = vmatmul.mubr.msk.bf16.vlgmr.msra.gmra.mrb[0].mxu0 %vm373_vm0, %v335_v9  ;;  %1430 = vmatmul.mubr.msk.bf16.vlgmr.msra.gmra.mrb[0].mxu1 %vm373_vm0, %v343_v17  ;;  %v313_v36 = vld [vmem:[%s1774_s24 + $0x58] sm:$0xff]  ;;  %v314_v37 = vld [vmem:[%s1774_s24 + $0x60] sm:$0xff]  ;;  %v315_v38 = vld [vmem:[%s1774_s24 + $0x68] sm:$0xff] }
  0x3b   : > { %1417 = vmatprep.mubr.msk.bf16.mxu0 %vm373_vm0, %v336_v10  ;;  %1433 = vmatprep.mubr.msk.bf16.mxu1 %vm373_vm0, %v344_v22  ;;  %v328_v39 = vld [vmem:[%s1774_s24 + $0xd0] sm:$0xff]  ;;  %v329_v40 = vld [vmem:[%s1774_s24 + $0xd8] sm:$0xff]  ;;  %v330_v41 = vld [vmem:[%s1774_s24 + $0xe0] sm:$0xff]  ;;  %v339_v43 = vpack.c.bf16 %v313_v36, %v312_v35  ;;  %v340_v44 = vpack.c.bf16 %v315_v38, %v314_v37 }
  0x3c   : > { %1445 = vmatprep.subr.bf16.mxu1 %v1572_v28  ;;  %v331_v42 = vld [vmem:[%s1774_s24 + $0xe8] sm:$0xff]  ;;  %v347_v45 = vpack.c.bf16 %v329_v40, %v328_v39  ;;  %v316_v47 = vld [vmem:[%s1774_s24 + $0x70] sm:$0xff]  ;;  %v317_v48 = vld [vmem:[%s1774_s24 + $0x78] sm:$0xff] }
  0x3d   : > { %1446 = vmatpush3.bf16.msra.mxu1 %v1572_v28  ;;  %v348_v46 = vpack.c.bf16 %v331_v42, %v330_v41  ;;  %v332_v49 = vld [vmem:[%s1774_s24 + $0xf0] sm:$0xff]  ;;  %v333_v50 = vld [vmem:[%s1774_s24 + $0xf8] sm:$0xff]  ;;  %v341_v51 = vpack.c.bf16 %v317_v48, %v316_v47  ;;  %v1576_v54 = vld [vmem:[%s2099_s5] sm:$0xff]  }
  0x3e   : > { %1447 = vmatprep.subr.bf16.mxu1 %v1573_v30  ;;  %v349_v52 = vpack.c.bf16 %v333_v50, %v332_v49  ;;  %v1575_v53 = vld [vmem:[%s2097_s3 + $0x18] sm:$0xff]   ;;  %v1577_v55 = vld [vmem:[%s2099_s5 + $0x8] sm:$0xff]   ;;  %1485 = vmatprep.subr.bf16.mxu0 %v1576_v54  ;;  %v1578_v56 = vld [vmem:[%s2099_s5 + $0x10] sm:$0xff]  }
  0x3f   : > { %1486 = vmatpush3.bf16.msra.mxu0 %v1576_v54  ;;  %v1858_v57 = vld [vmem:[%s2096_s2] ss:$0 sm:$0xff] }
  0x40   : > { %1487 = vmatprep.subr.bf16.mxu0 %v1577_v55 }
  0x41   : > { %1448 = vmatpush3.bf16.msra.mxu1 %v1573_v30 }
  0x42   : > { %1418 = vmatmul.mubr.msk.bf16.gmra.mrb[4].mxu0 %vm373_vm0, %v337_v29  ;;  %1434 = vmatmul.mubr.msk.bf16.gmra.mrb[4].mxu1 %vm373_vm0, %v345_v32 }
  0x43   : > { %1421 = vmatprep.mubr.msk.bf16.mxu0 %vm373_vm0, %v338_v31  ;;  %1437 = vmatprep.mubr.msk.bf16.mxu1 %vm373_vm0, %v346_v34 }
  0x44   : > { %1449 = vmatprep.subr.bf16.mxu1 %v1574_v33  ;;  %1488 = vmatpush3.bf16.msra.mxu0 %v1577_v55 }
  0x45   : > { %1450 = vmatpush3.bf16.msra.mxu1 %v1574_v33  ;;  %1489 = vmatprep.subr.bf16.mxu0 %v1578_v56 }
  0x46   : > { %1451 = vmatprep.subr.bf16.mxu1 %v1575_v53 }
  0x48   : > { %1490 = vmatpush3.bf16.msra.mxu0 %v1578_v56 }
  0x49   : > { %1452 = vmatpush3.bf16.msra.mxu1 %v1575_v53 }
  0x4a   : > { %1422 = vmatmul.mubr.msk.bf16.gmra.mrb[8].mxu0 %vm373_vm0, %v339_v43  ;;  %1438 = vmatmul.mubr.msk.bf16.gmra.mrb[8].mxu1 %vm373_vm0, %v347_v45 }
  0x4b   : > { %1425 = vmatprep.mubr.msk.bf16.mxu0 %vm373_vm0, %v340_v44  ;;  %1441 = vmatprep.mubr.msk.bf16.mxu1 %vm373_vm0, %v348_v46 }
  0x52   : > { %1426 = vmatmul.mubr.msk.bf16.gmra.mrb[12].mxu0 %vm373_vm0, %v341_v51  ;;  %1442 = vmatmul.mubr.msk.bf16.gmra.mrb[12].mxu1 %vm373_vm0, %v349_v52 }
 0x10d   : > { %v1415_v58 = vpop.f32.mrb[0].mxu0  ;;  %v1431_v61 = vpop.f32.mrb[0].mxu1 }
 0x10e   : > { %v465_v59 = vadd.f32 %v1415_v58, %v1858_v57  ;;  %v456_v60 = vpop.f32.mrb[1].mxu0  ;;  %v529_v0 = vadd.f32 %v1431_v61, %v1858_v57  ;;  %v520_v1 = vpop.f32.mrb[1].mxu1 }
 0x10f   : > { %v457_v62 = vadd.f32 %v1858_v57, %v456_v60  ;;  %v1416_v63 = vpop.f32.mrb[2].mxu0  ;;  %v521_v4 = vadd.f32 %v1858_v57, %v520_v1  ;;  %v1432_v5 = vpop.f32.mrb[2].mxu1 }
 0x110   : > { %v468_v2 = vadd.f32 %v1416_v63, %v1858_v57  ;;  %v459_v3 = vpop.f32.mrb[3].mxu0  ;;  %v601_v7 = vmax.f32 %v529_v0, 0.0  ;;  %v532_v8 = vadd.f32 %v1432_v5, %v1858_v57  ;;  %v523_v9 = vpop.f32.mrb[3].mxu1  ;;  %v585_v10 = vmax.f32 %v465_v59, 0.0 }
 0x111   : > { %v460_v6 = vadd.f32 %v1858_v57, %v459_v3  ;;  %v599_v12 = vmax.f32 %v521_v4, 0.0  ;;  %v524_v13 = vadd.f32 %v1858_v57, %v523_v9  ;;  %v583_v14 = vmax.f32 %v457_v62, 0.0 }
 0x112   : > { %v586_v11 = vmax.f32 %v468_v2, 0.0  ;;  %v602_v16 = vmax.f32 %v532_v8, 0.0 }
 0x113   : > { %v584_v15 = vmax.f32 %v460_v6, 0.0  ;;  %v600_v18 = vmax.f32 %v524_v13, 0.0 }
 0x114   : > { %v616_v17 = vpack.c.bf16 %v586_v11, %v585_v10  ;;  %v1868_v21 = vpack.c.bf16 %v602_v16, %v601_v7 }
 0x115   : > { %v615_v19 = vpack.c.bf16 %v584_v15, %v583_v14  ;;  %v1419_v20 = vpop.f32.mrb[4].mxu0  ;;  %v1871_v24 = vpack.c.bf16 %v600_v18, %v599_v12  ;;  %v1435_v25 = vpop.f32.mrb[4].mxu1 }
 0x116   : > { %v481_v22 = vadd.f32 %v1419_v20, %v1858_v57  ;;  %v472_v23 = vpop.f32.mrb[5].mxu0  ;;  %v545_v28 = vadd.f32 %v1435_v25, %v1858_v57  ;;  %v536_v29 = vpop.f32.mrb[5].mxu1 }
 0x117   : > { %v473_v26 = vadd.f32 %v1858_v57, %v472_v23  ;;  %v1420_v27 = vpop.f32.mrb[6].mxu0  ;;  %1453 = vmatprep.mubr.msk.bf16.mxu1 %vm670_vm1, %v615_v19  ;;  %v537_v32 = vadd.f32 %v1858_v57, %v536_v29  ;;  %v1436_v33 = vpop.f32.mrb[6].mxu1 }
 0x118   : > { %v484_v30 = vadd.f32 %v1420_v27, %v1858_v57  ;;  %v475_v31 = vpop.f32.mrb[7].mxu0  ;;  %1454 = vmatmul.mubr.msk.bf16.vlgmr.msra.gmra.mrb[16].mxu1 %vm670_vm1, %v616_v17  ;;  %v605_v35 = vmax.f32 %v545_v28, 0.0  ;;  %v548_v36 = vadd.f32 %v1436_v33, %v1858_v57  ;;  %v539_v37 = vpop.f32.mrb[7].mxu1  ;;  %v589_v38 = vmax.f32 %v481_v22, 0.0 }
 0x119   : > { %v476_v34 = vadd.f32 %v1858_v57, %v475_v31  ;;  %v603_v40 = vmax.f32 %v537_v32, 0.0  ;;  %v540_v41 = vadd.f32 %v1858_v57, %v539_v37  ;;  %v587_v42 = vmax.f32 %v473_v26, 0.0 }
 0x11a   : > { %v590_v39 = vmax.f32 %v484_v30, 0.0  ;;  %v606_v44 = vmax.f32 %v548_v36, 0.0 }
 0x11b   : > { %v588_v43 = vmax.f32 %v476_v34, 0.0  ;;  %v604_v46 = vmax.f32 %v540_v41, 0.0 }
 0x11c   : > { %v618_v45 = vpack.c.bf16 %v590_v39, %v589_v38  ;;  %v1882_v49 = vpack.c.bf16 %v606_v44, %v605_v35 }
 0x11d   : > { %v617_v47 = vpack.c.bf16 %v588_v43, %v587_v42  ;;  %v1423_v48 = vpop.f32.mrb[8].mxu0  ;;  %v625_v52 = vpack.c.bf16 %v604_v46, %v603_v40  ;;  %v1439_v53 = vpop.f32.mrb[8].mxu1 }
 0x11e   : > { %v497_v50 = vadd.f32 %v1423_v48, %v1858_v57  ;;  %v488_v51 = vpop.f32.mrb[9].mxu0  ;;  %v561_v56 = vadd.f32 %v1439_v53, %v1858_v57  ;;  %v552_v58 = vpop.f32.mrb[9].mxu1 }
 0x11f   : > { %v489_v54 = vadd.f32 %v1858_v57, %v488_v51  ;;  %v1424_v55 = vpop.f32.mrb[10].mxu0  ;;  %1457 = vmatprep.mubr.msk.bf16.mxu1 %vm670_vm1, %v617_v47  ;;  %v553_v61 = vadd.f32 %v1858_v57, %v552_v58  ;;  %v1440_v62 = vpop.f32.mrb[10].mxu1 }
 0x120   : > { %v500_v59 = vadd.f32 %v1424_v55, %v1858_v57  ;;  %v491_v60 = vpop.f32.mrb[11].mxu0  ;;  %1458 = vmatmul.mubr.msk.bf16.gmra.mrb[20].mxu1 %vm670_vm1, %v618_v45  ;;  %v609_v0 = vmax.f32 %v561_v56, 0.0  ;;  %v564_v1 = vadd.f32 %v1440_v62, %v1858_v57  ;;  %v555_v2 = vpop.f32.mrb[11].mxu1  ;;  %v593_v3 = vmax.f32 %v497_v50, 0.0 }
 0x121   : > { %v492_v63 = vadd.f32 %v1858_v57, %v491_v60  ;;  %v607_v5 = vmax.f32 %v553_v61, 0.0  ;;  %v556_v6 = vadd.f32 %v1858_v57, %v555_v2  ;;  %v591_v7 = vmax.f32 %v489_v54, 0.0 }
 0x122   : > { %v594_v4 = vmax.f32 %v500_v59, 0.0  ;;  %v610_v9 = vmax.f32 %v564_v1, 0.0 }
 0x123   : > { %v592_v8 = vmax.f32 %v492_v63, 0.0  ;;  %v608_v11 = vmax.f32 %v556_v6, 0.0 }
 0x124   : > { %v620_v10 = vpack.c.bf16 %v594_v4, %v593_v3  ;;  %v628_v14 = vpack.c.bf16 %v610_v9, %v609_v0 }
 0x125   : > { %v619_v12 = vpack.c.bf16 %v592_v8, %v591_v7  ;;  %v1427_v13 = vpop.f32.mrb[12].mxu0  ;;  %v627_v17 = vpack.c.bf16 %v608_v11, %v607_v5  ;;  %v1443_v18 = vpop.f32.mrb[12].mxu1 }
 0x126   : > { %v513_v15 = vadd.f32 %v1427_v13, %v1858_v57  ;;  %v504_v16 = vpop.f32.mrb[13].mxu0  ;;  %v577_v22 = vadd.f32 %v1443_v18, %v1858_v57  ;;  %v568_v23 = vpop.f32.mrb[13].mxu1 }
 0x127   : > { %v505_v19 = vadd.f32 %v1858_v57, %v504_v16  ;;  %v1428_v20 = vpop.f32.mrb[14].mxu0  ;;  %1461 = vmatprep.mubr.msk.bf16.mxu1 %vm670_vm1, %v619_v12  ;;  %v569_v27 = vadd.f32 %v1858_v57, %v568_v23  ;;  %v1444_v28 = vpop.f32.mrb[14].mxu1 }
 0x128   : > { %v516_v25 = vadd.f32 %v1428_v20, %v1858_v57  ;;  %v507_v26 = vpop.f32.mrb[15].mxu0  ;;  %1462 = vmatmul.mubr.msk.bf16.gmra.mrb[24].mxu1 %vm670_vm1, %v620_v10  ;;  %v613_v30 = vmax.f32 %v577_v22, 0.0  ;;  %v580_v31 = vadd.f32 %v1444_v28, %v1858_v57  ;;  %v571_v32 = vpop.f32.mrb[15].mxu1  ;;  %v597_v33 = vmax.f32 %v513_v15, 0.0 }
 0x129   : > { %v508_v29 = vadd.f32 %v1858_v57, %v507_v26  ;;  %v611_v35 = vmax.f32 %v569_v27, 0.0  ;;  %v572_v36 = vadd.f32 %v1858_v57, %v571_v32  ;;  %v595_v37 = vmax.f32 %v505_v19, 0.0  ;;  %v1579_v57 = vld [vmem:[%s2099_s5 + $0x18] sm:$0xff]  }
 0x12a   : > { %v598_v34 = vmax.f32 %v516_v25, 0.0  ;;  %v614_v39 = vmax.f32 %v580_v31, 0.0  ;;  %1491 = vmatprep.subr.bf16.mxu0 %v1579_v57 }
 0x12b   : > { %v596_v38 = vmax.f32 %v508_v29, 0.0  ;;  %v612_v41 = vmax.f32 %v572_v36, 0.0  ;;  %1492 = vmatpush3.bf16.msra.mxu0 %v1579_v57 }
 0x12c   : > { %v622_v40 = vpack.c.bf16 %v598_v34, %v597_v33  ;;  %v630_v43 = vpack.c.bf16 %v614_v39, %v613_v30 }
 0x12d   : > { %v621_v42 = vpack.c.bf16 %v596_v38, %v595_v37  ;;  %v629_v44 = vpack.c.bf16 %v612_v41, %v611_v35 }
 0x12f   : > { %1465 = vmatprep.mubr.msk.bf16.mxu1 %vm670_vm1, %v621_v42 }
 0x130   : > { %1466 = vmatmul.mubr.msk.bf16.gmra.mrb[28].mxu1 %vm670_vm1, %v622_v40 }
 0x131   : > { %1469 = vmatprep.mubr.msk.bf16.mxu1 %vm670_vm1, %v1871_v24 }
 0x138   : > { %1470 = vmatmul.mubr.msk.bf16.gmra.mrb[32].mxu1 %vm670_vm1, %v1868_v21  ;;  %v1923_v21 = vld [vmem:[%s2098_s4] ss:$0 sm:$0xff] }
 0x139   : > { %1473 = vmatprep.mubr.msk.bf16.mxu1 %vm670_vm1, %v625_v52 }
 0x140   : > { %1474 = vmatmul.mubr.msk.bf16.gmra.mrb[36].mxu1 %vm670_vm1, %v1882_v49 }
 0x141   : > { %1477 = vmatprep.mubr.msk.bf16.mxu1 %vm670_vm1, %v627_v17 }
 0x148   : > { %1478 = vmatmul.mubr.msk.bf16.gmra.mrb[40].mxu1 %vm670_vm1, %v628_v14 }
 0x149   : > { %1481 = vmatprep.mubr.msk.bf16.mxu1 %vm670_vm1, %v629_v44 }
 0x150   : > { %1482 = vmatmul.mubr.msk.bf16.gmra.mrb[44].mxu1 %vm670_vm1, %v630_v43 }
 0x1eb   : > { %v1455_v24 = vpop.f32.mrb[16].mxu1 }
 0x1ec   : > { %v762_v45 = vadd.f32 %v1455_v24, %v1923_v21  ;;  %v753_v46 = vpop.f32.mrb[17].mxu1 }
 0x1ed   : > { %v754_v47 = vadd.f32 %v1923_v21, %v753_v46  ;;  %v1456_v48 = vpop.f32.mrb[18].mxu1 }
 0x1ee   : > { %v765_v49 = vadd.f32 %v1456_v48, %v1923_v21  ;;  %v756_v50 = vpop.f32.mrb[19].mxu1  ;;  %v882_v52 = vmax.f32 %v762_v45, 0.0 }
 0x1ef   : > { %v757_v51 = vadd.f32 %v1923_v21, %v756_v50  ;;  %v880_v54 = vmax.f32 %v754_v47, 0.0 }
 0x1f0   : > { %v883_v53 = vmax.f32 %v765_v49, 0.0 }
 0x1f1   : > { %v881_v55 = vmax.f32 %v757_v51, 0.0 }
 0x1f2   : > { %v913_v56 = vpack.c.bf16 %v883_v53, %v882_v52 }
 0x1f3   : > { %v912_v58 = vpack.c.bf16 %v881_v55, %v880_v54  ;;  %v1459_v59 = vpop.f32.mrb[20].mxu1 }
 0x1f4   : > { %v778_v60 = vadd.f32 %v1459_v59, %v1923_v21  ;;  %v769_v61 = vpop.f32.mrb[21].mxu1 }
 0x1f5   : > { %v770_v62 = vadd.f32 %v1923_v21, %v769_v61  ;;  %v1460_v63 = vpop.f32.mrb[22].mxu1  ;;  %1493 = vmatprep.mubr.msk.bf16.mxu0 %vm670_vm1, %v912_v58 }
 0x1f6   : > { %v781_v0 = vadd.f32 %v1460_v63, %v1923_v21  ;;  %v772_v1 = vpop.f32.mrb[23].mxu1  ;;  %1494 = vmatmul.mubr.msk.bf16.vlgmr.msra.gmra.mrb[16].mxu0 %vm670_vm1, %v913_v56  ;;  %v886_v3 = vmax.f32 %v778_v60, 0.0 }
 0x1f7   : > { %v773_v2 = vadd.f32 %v1923_v21, %v772_v1  ;;  %v884_v5 = vmax.f32 %v770_v62, 0.0 }
 0x1f8   : > { %v887_v4 = vmax.f32 %v781_v0, 0.0 }
 0x1f9   : > { %v885_v6 = vmax.f32 %v773_v2, 0.0 }
 0x1fa   : > { %v915_v7 = vpack.c.bf16 %v887_v4, %v886_v3 }
 0x1fb   : > { %v914_v8 = vpack.c.bf16 %v885_v6, %v884_v5  ;;  %v1463_v9 = vpop.f32.mrb[24].mxu1 }
 0x1fc   : > { %v794_v10 = vadd.f32 %v1463_v9, %v1923_v21  ;;  %v785_v11 = vpop.f32.mrb[25].mxu1 }
 0x1fd   : > { %v786_v12 = vadd.f32 %v1923_v21, %v785_v11  ;;  %v1464_v13 = vpop.f32.mrb[26].mxu1  ;;  %1497 = vmatprep.mubr.msk.bf16.mxu0 %vm670_vm1, %v914_v8 }
 0x1fe   : > { %v797_v14 = vadd.f32 %v1464_v13, %v1923_v21  ;;  %v788_v15 = vpop.f32.mrb[27].mxu1  ;;  %1498 = vmatmul.mubr.msk.bf16.gmra.mrb[20].mxu0 %vm670_vm1, %v915_v7  ;;  %v890_v17 = vmax.f32 %v794_v10, 0.0 }
 0x1ff   : > { %v789_v16 = vadd.f32 %v1923_v21, %v788_v15  ;;  %v888_v19 = vmax.f32 %v786_v12, 0.0 }
 0x200   : > { %v891_v18 = vmax.f32 %v797_v14, 0.0 }
 0x201   : > { %v889_v20 = vmax.f32 %v789_v16, 0.0 }
 0x202   : > { %v917_v22 = vpack.c.bf16 %v891_v18, %v890_v17 }
 0x203   : > { %v916_v23 = vpack.c.bf16 %v889_v20, %v888_v19  ;;  %v1467_v25 = vpop.f32.mrb[28].mxu1 }
 0x204   : > { %v810_v26 = vadd.f32 %v1467_v25, %v1923_v21  ;;  %v801_v27 = vpop.f32.mrb[29].mxu1 }
 0x205   : > { %v802_v28 = vadd.f32 %v1923_v21, %v801_v27  ;;  %v1468_v29 = vpop.f32.mrb[30].mxu1  ;;  %1501 = vmatprep.mubr.msk.bf16.mxu0 %vm670_vm1, %v916_v23 }
 0x206   : > { %v813_v30 = vadd.f32 %v1468_v29, %v1923_v21  ;;  %v804_v31 = vpop.f32.mrb[31].mxu1  ;;  %1502 = vmatmul.mubr.msk.bf16.gmra.mrb[24].mxu0 %vm670_vm1, %v917_v22  ;;  %v894_v33 = vmax.f32 %v810_v26, 0.0 }
 0x207   : > { %v805_v32 = vadd.f32 %v1923_v21, %v804_v31  ;;  %v892_v35 = vmax.f32 %v802_v28, 0.0 }
 0x208   : > { %v895_v34 = vmax.f32 %v813_v30, 0.0 }
 0x209   : > { %v893_v36 = vmax.f32 %v805_v32, 0.0  ;;  %v1978_v32 = vld [vmem:[%s2100_s6] ss:$0 sm:$0xff] }
 0x20a   : > { %v919_v37 = vpack.c.bf16 %v895_v34, %v894_v33 }
 0x20b   : > { %v918_v38 = vpack.c.bf16 %v893_v36, %v892_v35  ;;  %v1471_v39 = vpop.f32.mrb[32].mxu1 }
 0x20c   : > { %v826_v40 = vadd.f32 %v1471_v39, %v1923_v21  ;;  %v817_v41 = vpop.f32.mrb[33].mxu1 }
 0x20d   : > { %v818_v42 = vadd.f32 %v1923_v21, %v817_v41  ;;  %v1472_v43 = vpop.f32.mrb[34].mxu1  ;;  %1505 = vmatprep.mubr.msk.bf16.mxu0 %vm670_vm1, %v918_v38 }
 0x20e   : > { %v829_v44 = vadd.f32 %v1472_v43, %v1923_v21  ;;  %v820_v57 = vpop.f32.mrb[35].mxu1  ;;  %1506 = vmatmul.mubr.msk.bf16.gmra.mrb[28].mxu0 %vm670_vm1, %v919_v37  ;;  %v898_v45 = vmax.f32 %v826_v40, 0.0 }
 0x20f   : > { %v821_v24 = vadd.f32 %v1923_v21, %v820_v57  ;;  %v896_v47 = vmax.f32 %v818_v42, 0.0 }
 0x210   : > { %v899_v46 = vmax.f32 %v829_v44, 0.0 }
 0x211   : > { %v897_v48 = vmax.f32 %v821_v24, 0.0 }
 0x212   : > { %v921_v49 = vpack.c.bf16 %v899_v46, %v898_v45 }
 0x213   : > { %v920_v50 = vpack.c.bf16 %v897_v48, %v896_v47  ;;  %v1475_v51 = vpop.f32.mrb[36].mxu1 }
 0x214   : > { %v842_v52 = vadd.f32 %v1475_v51, %v1923_v21  ;;  %v833_v53 = vpop.f32.mrb[37].mxu1 }
 0x215   : > { %v834_v54 = vadd.f32 %v1923_v21, %v833_v53  ;;  %v1476_v55 = vpop.f32.mrb[38].mxu1  ;;  %1509 = vmatprep.mubr.msk.bf16.mxu0 %vm670_vm1, %v920_v50 }
 0x216   : > { %v845_v56 = vadd.f32 %v1476_v55, %v1923_v21  ;;  %v836_v58 = vpop.f32.mrb[39].mxu1  ;;  %1510 = vmatmul.mubr.msk.bf16.gmra.mrb[32].mxu0 %vm670_vm1, %v921_v49  ;;  %v902_v60 = vmax.f32 %v842_v52, 0.0 }
 0x217   : > { %v837_v59 = vadd.f32 %v1923_v21, %v836_v58  ;;  %v900_v62 = vmax.f32 %v834_v54, 0.0 }
 0x218   : > { %v903_v61 = vmax.f32 %v845_v56, 0.0 }
 0x219   : > { %v901_v63 = vmax.f32 %v837_v59, 0.0 }
 0x21a   : > { %v923_v0 = vpack.c.bf16 %v903_v61, %v902_v60 }
 0x21b   : > { %v922_v1 = vpack.c.bf16 %v901_v63, %v900_v62  ;;  %v1479_v2 = vpop.f32.mrb[40].mxu1 }
 0x21c   : > { %v858_v3 = vadd.f32 %v1479_v2, %v1923_v21  ;;  %v849_v4 = vpop.f32.mrb[41].mxu1 }
 0x21d   : > { %v850_v5 = vadd.f32 %v1923_v21, %v849_v4  ;;  %v1480_v6 = vpop.f32.mrb[42].mxu1  ;;  %1513 = vmatprep.mubr.msk.bf16.mxu0 %vm670_vm1, %v922_v1 }
 0x21e   : > { %v861_v7 = vadd.f32 %v1480_v6, %v1923_v21  ;;  %v852_v8 = vpop.f32.mrb[43].mxu1  ;;  %1514 = vmatmul.mubr.msk.bf16.gmra.mrb[36].mxu0 %vm670_vm1, %v923_v0  ;;  %v906_v10 = vmax.f32 %v858_v3, 0.0 }
 0x21f   : > { %v853_v9 = vadd.f32 %v1923_v21, %v852_v8  ;;  %v904_v12 = vmax.f32 %v850_v5, 0.0 }
 0x220   : > { %v907_v11 = vmax.f32 %v861_v7, 0.0 }
 0x221   : > { %v905_v13 = vmax.f32 %v853_v9, 0.0 }
 0x222   : > { %v925_v14 = vpack.c.bf16 %v907_v11, %v906_v10 }
 0x223   : > { %v924_v15 = vpack.c.bf16 %v905_v13, %v904_v12  ;;  %v1483_v16 = vpop.f32.mrb[44].mxu1 }
 0x224   : > { %v874_v17 = vadd.f32 %v1483_v16, %v1923_v21  ;;  %v865_v18 = vpop.f32.mrb[45].mxu1 }
 0x225   : > { %v866_v19 = vadd.f32 %v1923_v21, %v865_v18  ;;  %v1484_v20 = vpop.f32.mrb[46].mxu1  ;;  %1517 = vmatprep.mubr.msk.bf16.mxu0 %vm670_vm1, %v924_v15 }
 0x226   : > { %v877_v22 = vadd.f32 %v1484_v20, %v1923_v21  ;;  %v868_v23 = vpop.f32.mrb[47].mxu1  ;;  %1518 = vmatmul.mubr.msk.bf16.gmra.mrb[40].mxu0 %vm670_vm1, %v925_v14  ;;  %v910_v26 = vmax.f32 %v874_v17, 0.0 }
 0x227   : > { %v869_v25 = vadd.f32 %v1923_v21, %v868_v23  ;;  %v908_v28 = vmax.f32 %v866_v19, 0.0 }
 0x228   : > { %v911_v27 = vmax.f32 %v877_v22, 0.0 }
 0x229   : > { %v909_v29 = vmax.f32 %v869_v25, 0.0 }
 0x22a   : > { %v927_v30 = vpack.c.bf16 %v911_v27, %v910_v26 }
 0x22b   : > { %v926_v31 = vpack.c.bf16 %v909_v29, %v908_v28 }
 0x22d   : > { %1521 = vmatprep.mubr.msk.bf16.mxu0 %vm670_vm1, %v926_v31 }
 0x22e   : > { %1522 = vmatmul.mubr.msk.bf16.gmra.mrb[44].mxu0 %vm670_vm1, %v927_v30 }
 0x2c9   : > { %v1495_v21 = vpop.f32.mrb[16].mxu0 }
 0x2ca   : > { %v1058_v33 = vadd.f32 %v1495_v21, %v1978_v32  ;;  %v1049_v34 = vpop.f32.mrb[17].mxu0 }
 0x2cb   : > { %v1050_v35 = vadd.f32 %v1978_v32, %v1049_v34  ;;  %v1496_v36 = vpop.f32.mrb[18].mxu0 }
 0x2cc   : > { %1179 = vst.msk [vmem:[%s1983_s21 + $0x10] sm:$0xff] %vm1176_vm2, %v1058_v33  ;;  %v1061_v37 = vadd.f32 %v1496_v36, %v1978_v32  ;;  %v1052_v38 = vpop.f32.mrb[19].mxu0 }
 0x2cd   : > { %1177 = vst.msk [vmem:[%s1983_s21] sm:$0xff] %vm1176_vm2, %v1050_v35  ;;  %v1053_v39 = vadd.f32 %v1978_v32, %v1052_v38 }
 0x2ce   : > { %1180 = vst.msk [vmem:[%s1983_s21 + $0x18] sm:$0xff] %vm1176_vm2, %v1061_v37 }
 0x2cf   : > { %1178 = vst.msk [vmem:[%s1983_s21 + $0x8] sm:$0xff] %vm1176_vm2, %v1053_v39 }
 0x2d1   : > { %v1499_v40 = vpop.f32.mrb[20].mxu0 }
 0x2d2   : > { %v1074_v41 = vadd.f32 %v1499_v40, %v1978_v32  ;;  %v1065_v42 = vpop.f32.mrb[21].mxu0 }
 0x2d3   : > { %v1066_v43 = vadd.f32 %v1978_v32, %v1065_v42  ;;  %v1500_v44 = vpop.f32.mrb[22].mxu0 }
 0x2d4   : > { %1183 = vst.msk [vmem:[%s1983_s21 + $0x30] sm:$0xff] %vm1176_vm2, %v1074_v41  ;;  %v1077_v57 = vadd.f32 %v1500_v44, %v1978_v32  ;;  %v1068_v24 = vpop.f32.mrb[23].mxu0 }
 0x2d5   : > { %1181 = vst.msk [vmem:[%s1983_s21 + $0x20] sm:$0xff] %vm1176_vm2, %v1066_v43  ;;  %v1069_v45 = vadd.f32 %v1978_v32, %v1068_v24 }
 0x2d6   : > { %1184 = vst.msk [vmem:[%s1983_s21 + $0x38] sm:$0xff] %vm1176_vm2, %v1077_v57 }
 0x2d7   : > { %1182 = vst.msk [vmem:[%s1983_s21 + $0x28] sm:$0xff] %vm1176_vm2, %v1069_v45 }
 0x2d9   : > { %v1503_v46 = vpop.f32.mrb[24].mxu0 }
 0x2da   : > { %v1090_v47 = vadd.f32 %v1503_v46, %v1978_v32  ;;  %v1081_v48 = vpop.f32.mrb[25].mxu0 }
 0x2db   : > { %v1082_v49 = vadd.f32 %v1978_v32, %v1081_v48  ;;  %v1504_v50 = vpop.f32.mrb[26].mxu0 }
 0x2dc   : > { %1187 = vst.msk [vmem:[%s1983_s21 + $0x50] sm:$0xff] %vm1176_vm2, %v1090_v47  ;;  %v1093_v51 = vadd.f32 %v1504_v50, %v1978_v32  ;;  %v1084_v52 = vpop.f32.mrb[27].mxu0 }
 0x2dd   : > { %1185 = vst.msk [vmem:[%s1983_s21 + $0x40] sm:$0xff] %vm1176_vm2, %v1082_v49  ;;  %v1085_v53 = vadd.f32 %v1978_v32, %v1084_v52 }
 0x2de   : > { %1188 = vst.msk [vmem:[%s1983_s21 + $0x58] sm:$0xff] %vm1176_vm2, %v1093_v51 }
 0x2df   : > { %1186 = vst.msk [vmem:[%s1983_s21 + $0x48] sm:$0xff] %vm1176_vm2, %v1085_v53 }
 0x2e1   : > { %v1507_v54 = vpop.f32.mrb[28].mxu0 }
 0x2e2   : > { %v1106_v55 = vadd.f32 %v1507_v54, %v1978_v32  ;;  %v1097_v56 = vpop.f32.mrb[29].mxu0 }
 0x2e3   : > { %v1098_v58 = vadd.f32 %v1978_v32, %v1097_v56  ;;  %v1508_v59 = vpop.f32.mrb[30].mxu0 }
 0x2e4   : > { %1191 = vst.msk [vmem:[%s1983_s21 + $0x70] sm:$0xff] %vm1176_vm2, %v1106_v55  ;;  %v1109_v60 = vadd.f32 %v1508_v59, %v1978_v32  ;;  %v1100_v61 = vpop.f32.mrb[31].mxu0 }
 0x2e5   : > { %1189 = vst.msk [vmem:[%s1983_s21 + $0x60] sm:$0xff] %vm1176_vm2, %v1098_v58  ;;  %v1101_v62 = vadd.f32 %v1978_v32, %v1100_v61 }
 0x2e6   : > { %1192 = vst.msk [vmem:[%s1983_s21 + $0x78] sm:$0xff] %vm1176_vm2, %v1109_v60 }
 0x2e7   : > { %1190 = vst.msk [vmem:[%s1983_s21 + $0x68] sm:$0xff] %vm1176_vm2, %v1101_v62 }
 0x2e9   : > { %v1511_v63 = vpop.f32.mrb[32].mxu0 }
 0x2ea   : > { %v1122_v0 = vadd.f32 %v1511_v63, %v1978_v32  ;;  %v1113_v1 = vpop.f32.mrb[33].mxu0 }
 0x2eb   : > { %v1114_v2 = vadd.f32 %v1978_v32, %v1113_v1  ;;  %v1512_v3 = vpop.f32.mrb[34].mxu0 }
 0x2ec   : > { %1195 = vst.msk [vmem:[%s1983_s21 + $0x90] sm:$0xff] %vm1176_vm2, %v1122_v0  ;;  %v1125_v4 = vadd.f32 %v1512_v3, %v1978_v32  ;;  %v1116_v5 = vpop.f32.mrb[35].mxu0 }
 0x2ed   : > { %1193 = vst.msk [vmem:[%s1983_s21 + $0x80] sm:$0xff] %vm1176_vm2, %v1114_v2  ;;  %v1117_v6 = vadd.f32 %v1978_v32, %v1116_v5 }
 0x2ee   : > { %1196 = vst.msk [vmem:[%s1983_s21 + $0x98] sm:$0xff] %vm1176_vm2, %v1125_v4 }
 0x2ef   : > { %1194 = vst.msk [vmem:[%s1983_s21 + $0x88] sm:$0xff] %vm1176_vm2, %v1117_v6 }
 0x2f1   : > { %v1515_v7 = vpop.f32.mrb[36].mxu0 }
 0x2f2   : > { %v1138_v8 = vadd.f32 %v1515_v7, %v1978_v32  ;;  %v1129_v9 = vpop.f32.mrb[37].mxu0 }
 0x2f3   : > { %v1130_v10 = vadd.f32 %v1978_v32, %v1129_v9  ;;  %v1516_v11 = vpop.f32.mrb[38].mxu0 }
 0x2f4   : > { %1199 = vst.msk [vmem:[%s1983_s21 + $0xb0] sm:$0xff] %vm1176_vm2, %v1138_v8  ;;  %v1141_v12 = vadd.f32 %v1516_v11, %v1978_v32  ;;  %v1132_v13 = vpop.f32.mrb[39].mxu0 }
 0x2f5   : > { %1197 = vst.msk [vmem:[%s1983_s21 + $0xa0] sm:$0xff] %vm1176_vm2, %v1130_v10  ;;  %v1133_v14 = vadd.f32 %v1978_v32, %v1132_v13 }
 0x2f6   : > { %1200 = vst.msk [vmem:[%s1983_s21 + $0xb8] sm:$0xff] %vm1176_vm2, %v1141_v12 }
 0x2f7   : > { %1198 = vst.msk [vmem:[%s1983_s21 + $0xa8] sm:$0xff] %vm1176_vm2, %v1133_v14 }
 0x2f9   : > { %v1519_v15 = vpop.f32.mrb[40].mxu0 }
 0x2fa   : > { %v1154_v16 = vadd.f32 %v1519_v15, %v1978_v32  ;;  %v1145_v17 = vpop.f32.mrb[41].mxu0 }
 0x2fb   : > { %v1146_v18 = vadd.f32 %v1978_v32, %v1145_v17  ;;  %v1520_v19 = vpop.f32.mrb[42].mxu0 }
 0x2fc   : > { %1203 = vst.msk [vmem:[%s1983_s21 + $0xd0] sm:$0xff] %vm1176_vm2, %v1154_v16  ;;  %v1157_v20 = vadd.f32 %v1520_v19, %v1978_v32  ;;  %v1148_v22 = vpop.f32.mrb[43].mxu0 }
 0x2fd   : > { %1201 = vst.msk [vmem:[%s1983_s21 + $0xc0] sm:$0xff] %vm1176_vm2, %v1146_v18  ;;  %v1149_v23 = vadd.f32 %v1978_v32, %v1148_v22 }
 0x2fe   : > { %1204 = vst.msk [vmem:[%s1983_s21 + $0xd8] sm:$0xff] %vm1176_vm2, %v1157_v20 }
 0x2ff   : > { %1202 = vst.msk [vmem:[%s1983_s21 + $0xc8] sm:$0xff] %vm1176_vm2, %v1149_v23 }
 0x301   : > { %v1523_v25 = vpop.f32.mrb[44].mxu0 }
 0x302   : > { %v1170_v26 = vadd.f32 %v1523_v25, %v1978_v32  ;;  %v1161_v27 = vpop.f32.mrb[45].mxu0 }
 0x303   : > { %v1162_v28 = vadd.f32 %v1978_v32, %v1161_v27  ;;  %v1524_v29 = vpop.f32.mrb[46].mxu0 }
 0x304   : > { %1207 = vst.msk [vmem:[%s1983_s21 + $0xf0] sm:$0xff] %vm1176_vm2, %v1170_v26  ;;  %v1173_v30 = vadd.f32 %v1524_v29, %v1978_v32  ;;  %v1164_v31 = vpop.f32.mrb[47].mxu0 }
 0x305   : > { %1205 = vst.msk [vmem:[%s1983_s21 + $0xe0] sm:$0xff] %vm1176_vm2, %v1162_v28  ;;  %v1165_v21 = vadd.f32 %v1978_v32, %v1164_v31 }
 0x306   : > { %1208 = vst.msk [vmem:[%s1983_s21 + $0xf8] sm:$0xff] %vm1176_vm2, %v1173_v30 }
 0x307   : > { %1206 = vst.msk [vmem:[%s1983_s21 + $0xe8] sm:$0xff] %vm1176_vm2, %v1165_v21 }
 0x308 PF: > { %p17_p8 = scmp.ge.s32.totalorder %s1709_s29, 4   ;;  %s2105_s24 = smov %s1636_s25 }
 0x309   : > { %s2106_s25 = smov %s1640_s26  ;;  %s2107_s26 = smov %s1719_s9 }
 0x30a   : > { %s2108_s27 = smov %s1709_s29  ;;  %19 = sbr.rel (!%p17_p8) target bundleno = 3 (0x3), region = 88 }
 0x311   :  { %1231 = vsyncpa [#allocation3], 1 }
 0x312   :  { %1233 = vsyncpa [#allocation3 + $0x1], 1 }

</bundles_post_ra>
